<compile_context>
chip_gen: v6e
topology: v6e:2x2x1
jax: 0.10.0
libtpu: 0.0.40
codegen_flags: <defaults>
</compile_context>

<pallas_src>
import functools

import jax
import jax.numpy as jnp
import numpy as np
from jax.experimental import pallas as pl
from jax.experimental.pallas import tpu as pltpu


def gnntep_kernel(x_ref, zbd_ref, wadj_ref, w1_ref, w2_ref, wfc_ref,
                  b12_ref, bn_ref, out_ref, *, nbatch, nnodes, use_bf16):
    """One grid step = one GNN branch (all batches, row-batched layout).

    x_ref    : (B*N, W)        input, row-batched (batch-major rows)
    zbd_ref  : (B*N, B*N)      kron(I_B, ones - eye) mask
    wadj_ref : (1, B*N, B*N)   kron(I_B, A_i) raw adjacency parameter
    w1_ref   : (1, W, H)       conv1 weight (shared across batch)
    w2_ref   : (1, H, H)       conv2 weight
    wfc_ref  : (1, H, C)       fc weight slice for this branch
    b12_ref  : (1, 2, H)       [b1; b2] packed biases
    bn_ref   : (1, B*N, 4)     [s1, t1, s2, t2] BN eval-mode scale/shift per row
    out_ref  : (1, B, C)       per-core partial fc output (resident accumulator)
    """
    g = pl.program_id(1)  # position along the "arbitrary" branch axis

    def mm(a, b):
        if use_bf16:
            a = a.astype(jnp.bfloat16)
            b = b.astype(jnp.bfloat16)
        return jnp.dot(a, b, preferred_element_type=jnp.float32)

    def segment_min(h):
        # per-batch min over node rows: (B*N, H) -> (B, H); static slices only
        parts = [jnp.min(h[b * nnodes:(b + 1) * nnodes, :], axis=0, keepdims=True)
                 for b in range(nbatch)]
        return parts[0] if nbatch == 1 else jnp.concatenate(parts, axis=0)

    x = x_ref[...]                                        # (B*N, W)
    # adj = kron(I_B, relu(A_i) * (ones - eye))
    adj = jnp.maximum(wadj_ref[0], 0.0) * zbd_ref[...]    # (B*N, B*N)
    rowsum = jnp.sum(adj, axis=1, keepdims=True)          # (B*N, 1) bias correction

    w1 = w1_ref[0]                                        # (W, H)
    w2 = w2_ref[0]                                        # (H, H)
    wfc = wfc_ref[0]                                      # (H, C)
    b12 = b12_ref[0]                                      # (2, H)
    b1 = b12[0:1, :]
    b2 = b12[1:2, :]
    bn = bn_ref[0]                                        # (B*N, 4)
    s1 = bn[:, 0:1]
    t1 = bn[:, 1:2]
    s2 = bn[:, 2:3]
    t2 = bn[:, 3:4]

    # ---- layer 1 (reassociated): adj @ (x W1 + b1) == (adj @ x) W1 + rowsum(adj)*b1
    h1 = jnp.maximum(mm(mm(adj, x), w1) + rowsum * b1, 0.0)   # (B*N, H)
    h1 = h1 * s1 + t1                                         # BN1 (eval), per node
    skip = segment_min(h1)                                    # (B, H)

    # ---- layer 2: adj @ (h1 W2 + b2)
    h2 = jnp.maximum(mm(adj, mm(h1, w2) + b2), 0.0)           # (B*N, H)
    h2 = h2 * s2 + t2                                         # BN2 (eval)
    hb = segment_min(h2) + skip                               # (B, H)

    # ---- this branch's fc contribution
    contrib = mm(hb, wfc)                                     # (B, C)

    @pl.when(g == 0)
    def _init():
        out_ref[...] = jnp.zeros_like(out_ref)

    out_ref[...] += contrib[None, :, :]


def prepare_gnntep_params(z, wadj, w1, b1, s1, t1, w2, b2, s2, t2, wfc, bfc,
                          *, batch_size):
    """One-time parameter layout (call at init time, NOT per forward)."""
    B = batch_size
    eye_b = jnp.eye(B, dtype=wadj.dtype)

    zbd = jnp.kron(eye_b, z)                                  # (B*N, B*N)
    wadjbd = jax.vmap(lambda a: jnp.kron(eye_b, a))(wadj)     # (ngnn, B*N, B*N)

    b12 = jnp.concatenate([b1, b2], axis=1)                   # (ngnn, 2, H)

    def tile_bn(v):                                           # (ngnn, N, 1) -> (ngnn, B*N, 1)
        return jnp.tile(v, (1, B, 1))

    bn = jnp.concatenate([tile_bn(s1), tile_bn(t1),
                          tile_bn(s2), tile_bn(t2)], axis=2)  # (ngnn, B*N, 4)

    return zbd, wadjbd, w1, w2, wfc, b12, bn, bfc


def gnntep_forward(x, zbd, wadjbd, w1, w2, wfc, b12, bn, bfc, *, use_bf16=False):
    B, N, W = x.shape
    ngnn, _, H = w1.shape
    C = wfc.shape[2]
    BN = B * N

    # Split branches across TensorCores when possible (2 TCs on v7x).
    P = 2 if (ngnn % 2 == 0 and ngnn >= 2) else 1
    G = ngnn // P

    x_rb = x.reshape(BN, W)   # row-batched: rows ordered (batch, node)

    kernel = functools.partial(gnntep_kernel, nbatch=B, nnodes=N,
                               use_bf16=use_bf16)

    def branch_spec(*tail):
        return pl.BlockSpec((1,) + tail, lambda p, g: (p * G + g, 0, 0))

    def shared_spec(*shape):
        return pl.BlockSpec(shape, lambda p, g: (0,) * len(shape))

    partial_out = pl.pallas_call(
        kernel,
        out_shape=jax.ShapeDtypeStruct((P, B, C), jnp.float32),
        grid_spec=pltpu.PrefetchScalarGridSpec(
            num_scalar_prefetch=0,
            grid=(P, G),                          # branch axis last (reduction)
            in_specs=[
                shared_spec(BN, W),               # x (revisited, DMA'd once)
                shared_spec(BN, BN),              # block-diag (ones - eye) mask
                branch_spec(BN, BN),              # block-diag adjacency params
                branch_spec(W, H),                # W1
                branch_spec(H, H),                # W2
                branch_spec(H, C),                # fc weight slice
                branch_spec(2, H),                # packed [b1; b2]
                branch_spec(BN, 4),               # packed BN scale/shift
            ],
            out_specs=pl.BlockSpec((1, B, C), lambda p, g: (p, 0, 0)),
        ),
        compiler_params=pltpu.CompilerParams(
            dimension_semantics=("parallel", "arbitrary"),
            vmem_limit_bytes=32 * 1024 * 1024,
        ),
    )(x_rb, zbd, wadjbd, w1, w2, wfc, b12, bn)

    # Sum partial fc outputs from the parallel split and add the fc bias.
    return jnp.sum(partial_out, axis=0) + bfc


def gnntep_reference(x, z, wadj, w1, b1, s1, t1, w2, b2, s2, t2, wfc, bfc):
    """Pure-JAX reference mirroring the PyTorch forward."""
    ngnn = wadj.shape[0]
    C = wfc.shape[2]
    outs = []
    for i in range(ngnn):
        adj = jnp.maximum(wadj[i], 0.0) * z                       # (N, N)
        xw = jnp.einsum('bnw,wh->bnh', x, w1[i]) + b1[i]          # (B, N, H)
        h1 = jnp.maximum(jnp.einsum('nm,bmh->bnh', adj, xw), 0.0)
        h1 = h1 * s1[i] + t1[i]
        skip = jnp.min(h1, axis=1)                                # (B, H)
        hw = jnp.einsum('bnh,hk->bnk', h1, w2[i]) + b2[i]
        h2 = jnp.maximum(jnp.einsum('nm,bmk->bnk', adj, hw), 0.0)
        h2 = h2 * s2[i] + t2[i]
        outs.append(jnp.min(h2, axis=1) + skip)                   # (B, H)
    h = jnp.concatenate(outs, axis=1)                             # (B, ngnn*H)
    return h @ wfc.reshape(ngnn * wfc.shape[1], C) + bfc[0]


if __name__ == "__main__":
    # Small shapes consistent with the module.
    B, N, W, H, C, NGNN = 2, 8, 16, 32, 4, 2
    eps = 1e-5

    key = jax.random.PRNGKey(0)
    ks = jax.random.split(key, 16)

    x = jax.random.normal(ks[0], (B, N, W), jnp.float32)
    z = (jnp.ones((N, N), jnp.float32) - jnp.eye(N, dtype=jnp.float32))

    wadj = jax.random.normal(ks[1], (NGNN, N, N), jnp.float32)
    w1 = jax.random.normal(ks[2], (NGNN, W, H), jnp.float32) * 0.1
    b1 = jax.random.normal(ks[3], (NGNN, 1, H), jnp.float32) * 0.1
    w2 = jax.random.normal(ks[4], (NGNN, H, H), jnp.float32) * 0.1
    b2 = jax.random.normal(ks[5], (NGNN, 1, H), jnp.float32) * 0.1

    def make_bn(kg, kb, km, kv):
        gamma = jax.random.uniform(kg, (NGNN, N), jnp.float32, 0.5, 1.5)
        beta = jax.random.normal(kb, (NGNN, N), jnp.float32) * 0.1
        rmean = jax.random.normal(km, (NGNN, N), jnp.float32) * 0.1
        rvar = jax.random.uniform(kv, (NGNN, N), jnp.float32, 0.5, 1.5)
        scale = gamma / jnp.sqrt(rvar + eps)
        shift = beta - rmean * scale
        return scale.reshape(NGNN, N, 1), shift.reshape(NGNN, N, 1)

    s1, t1 = make_bn(ks[6], ks[7], ks[8], ks[9])
    s2, t2 = make_bn(ks[10], ks[11], ks[12], ks[13])

    # nn.Linear(ngnn*H, C): weight (C, ngnn*H) -> stored as W.T per branch (ngnn, H, C)
    wfc = jax.random.normal(ks[14], (NGNN, H, C), jnp.float32) * 0.1
    bfc = jax.random.normal(ks[15], (1, C), jnp.float32) * 0.1

    # One-time layout prep (init time), then a jitted forward over (x, params).
    prep = prepare_gnntep_params(z, wadj, w1, b1, s1, t1, w2, b2, s2, t2,
                                 wfc, bfc, batch_size=B)
    prep = jax.tree_util.tree_map(jax.block_until_ready, prep)

    fwd = jax.jit(functools.partial(gnntep_forward, use_bf16=False))
    out = fwd(x, *prep)
    out = jax.block_until_ready(out)

    ref = gnntep_reference(x, z, wadj, w1, b1, s1, t1, w2, b2, s2, t2, wfc, bfc)
    np.testing.assert_allclose(np.asarray(out), np.asarray(ref),
                               rtol=1e-4, atol=1e-4)

    print("KERNEL_OK")
</pallas_src>

<mosaic_0001>
module attributes {stable_mosaic.version = 11 : i64} {
  func.func @gnntep_kernel(%arg0: i32, %arg1: i32, %arg2: memref<16x16xf32, #tpu.memory_space<vmem>>, %arg3: memref<16x16xf32, #tpu.memory_space<vmem>>, %arg4: memref<1x16x16xf32, #tpu.memory_space<vmem>>, %arg5: memref<1x16x32xf32, #tpu.memory_space<vmem>>, %arg6: memref<1x32x32xf32, #tpu.memory_space<vmem>>, %arg7: memref<1x32x4xf32, #tpu.memory_space<vmem>>, %arg8: memref<1x2x32xf32, #tpu.memory_space<vmem>>, %arg9: memref<1x16x4xf32, #tpu.memory_space<vmem>>, %arg10: memref<1x2x4xf32, #tpu.memory_space<vmem>>) attributes {dimension_semantics = [#tpu.dimension_semantics<parallel>, #tpu.dimension_semantics<arbitrary>], iteration_bounds = array<i64: 2, 1>, scalar_prefetch = 0 : i64, scratch_operands = 0 : i64, tpu.core_type = #tpu.core_type<tc>, window_params = [{pipeline_mode = #tpu.pipeline_mode<synchronous>, transform_indices = @transform_0, window_bounds = array<i64: 16, 16>}, {pipeline_mode = #tpu.pipeline_mode<synchronous>, transform_indices = @transform_1, window_bounds = array<i64: 16, 16>}, {transform_indices = @transform_2, window_bounds = array<i64: 1, 16, 16>}, {transform_indices = @transform_3, window_bounds = array<i64: 1, 16, 32>}, {transform_indices = @transform_4, window_bounds = array<i64: 1, 32, 32>}, {transform_indices = @transform_5, window_bounds = array<i64: 1, 32, 4>}, {transform_indices = @transform_6, window_bounds = array<i64: 1, 2, 32>}, {transform_indices = @transform_7, window_bounds = array<i64: 1, 16, 4>}, {transform_indices = @transform_8, window_bounds = array<i64: 1, 2, 4>}]} {
    %c0 = arith.constant 0 : index
    %c0_0 = arith.constant 0 : index
    %0 = vector.load %arg2[%c0, %c0_0] : memref<16x16xf32, #tpu.memory_space<vmem>>, vector<16x16xf32>
    %c0_1 = arith.constant 0 : index
    %c0_2 = arith.constant 0 : index
    %c0_3 = arith.constant 0 : index
    %1 = vector.load %arg4[%c0_1, %c0_2, %c0_3] : memref<1x16x16xf32, #tpu.memory_space<vmem>>, vector<1x16x16xf32>
    %2 = vector.shape_cast %1 : vector<1x16x16xf32> to vector<16x16xf32>
    %cst = arith.constant 0.000000e+00 : f32
    %3 = vector.broadcast %cst : f32 to vector<16x16xf32>
    %4 = arith.maximumf %2, %3 : vector<16x16xf32>
    %c0_4 = arith.constant 0 : index
    %c0_5 = arith.constant 0 : index
    %5 = vector.load %arg3[%c0_4, %c0_5] : memref<16x16xf32, #tpu.memory_space<vmem>>, vector<16x16xf32>
    %6 = arith.mulf %4, %5 : vector<16x16xf32>
    %cst_6 = arith.constant dense<0.000000e+00> : vector<16xf32>
    %7 = vector.multi_reduction <add>, %6, %cst_6 [1] : vector<16x16xf32> to vector<16xf32>
    %8 = vector.shape_cast %7 : vector<16xf32> to vector<16x1xf32>
    %c0_7 = arith.constant 0 : index
    %c0_8 = arith.constant 0 : index
    %c0_9 = arith.constant 0 : index
    %9 = vector.load %arg5[%c0_7, %c0_8, %c0_9] : memref<1x16x32xf32, #tpu.memory_space<vmem>>, vector<1x16x32xf32>
    %10 = vector.shape_cast %9 : vector<1x16x32xf32> to vector<16x32xf32>
    %c0_10 = arith.constant 0 : index
    %c0_11 = arith.constant 0 : index
    %c0_12 = arith.constant 0 : index
    %11 = vector.load %arg6[%c0_10, %c0_11, %c0_12] : memref<1x32x32xf32, #tpu.memory_space<vmem>>, vector<1x32x32xf32>
    %12 = vector.shape_cast %11 : vector<1x32x32xf32> to vector<32x32xf32>
    %c0_13 = arith.constant 0 : index
    %c0_14 = arith.constant 0 : index
    %c0_15 = arith.constant 0 : index
    %13 = vector.load %arg7[%c0_13, %c0_14, %c0_15] : memref<1x32x4xf32, #tpu.memory_space<vmem>>, vector<1x32x4xf32>
    %14 = vector.shape_cast %13 : vector<1x32x4xf32> to vector<32x4xf32>
    %c0_16 = arith.constant 0 : index
    %c0_17 = arith.constant 0 : index
    %c0_18 = arith.constant 0 : index
    %15 = vector.load %arg8[%c0_16, %c0_17, %c0_18] : memref<1x2x32xf32, #tpu.memory_space<vmem>>, vector<1x2x32xf32>
    %16 = vector.shape_cast %15 : vector<1x2x32xf32> to vector<2x32xf32>
    %17 = vector.extract_strided_slice %16 {offsets = [0, 0], sizes = [1, 32], strides = [1, 1]} : vector<2x32xf32> to vector<1x32xf32>
    %18 = vector.extract_strided_slice %16 {offsets = [1, 0], sizes = [1, 32], strides = [1, 1]} : vector<2x32xf32> to vector<1x32xf32>
    %c0_19 = arith.constant 0 : index
    %c0_20 = arith.constant 0 : index
    %c0_21 = arith.constant 0 : index
    %19 = vector.load %arg9[%c0_19, %c0_20, %c0_21] : memref<1x16x4xf32, #tpu.memory_space<vmem>>, vector<1x16x4xf32>
    %20 = vector.shape_cast %19 : vector<1x16x4xf32> to vector<16x4xf32>
    %21 = vector.extract_strided_slice %20 {offsets = [0, 0], sizes = [16, 1], strides = [1, 1]} : vector<16x4xf32> to vector<16x1xf32>
    %22 = vector.extract_strided_slice %20 {offsets = [0, 1], sizes = [16, 1], strides = [1, 1]} : vector<16x4xf32> to vector<16x1xf32>
    %23 = vector.extract_strided_slice %20 {offsets = [0, 2], sizes = [16, 1], strides = [1, 1]} : vector<16x4xf32> to vector<16x1xf32>
    %24 = vector.extract_strided_slice %20 {offsets = [0, 3], sizes = [16, 1], strides = [1, 1]} : vector<16x4xf32> to vector<16x1xf32>
    %cst_22 = arith.constant dense<0.000000e+00> : vector<16x16xf32>
    %25 = tpu.matmul %6, %0, %cst_22 {dimension_numbers = #tpu.dot_dimension_numbers<[1], [0], [0], [1], [0, 0, 1, 1], [], []>} : vector<16x16xf32>, vector<16x16xf32>, vector<16x16xf32> -> vector<16x16xf32>
    %cst_23 = arith.constant dense<0.000000e+00> : vector<16x32xf32>
    %26 = tpu.matmul %25, %10, %cst_23 {dimension_numbers = #tpu.dot_dimension_numbers<[1], [0], [0], [1], [0, 0, 1, 1], [], []>} : vector<16x16xf32>, vector<16x32xf32>, vector<16x32xf32> -> vector<16x32xf32>
    %27 = vector.broadcast %8 : vector<16x1xf32> to vector<16x32xf32>
    %28 = vector.broadcast %17 : vector<1x32xf32> to vector<16x32xf32>
    %29 = arith.mulf %27, %28 : vector<16x32xf32>
    %30 = arith.addf %26, %29 : vector<16x32xf32>
    %cst_24 = arith.constant 0.000000e+00 : f32
    %31 = vector.broadcast %cst_24 : f32 to vector<16x32xf32>
    %32 = arith.maximumf %30, %31 : vector<16x32xf32>
    %33 = vector.broadcast %21 : vector<16x1xf32> to vector<16x32xf32>
    %34 = arith.mulf %32, %33 : vector<16x32xf32>
    %35 = vector.broadcast %22 : vector<16x1xf32> to vector<16x32xf32>
    %36 = arith.addf %34, %35 : vector<16x32xf32>
    %37 = vector.extract_strided_slice %36 {offsets = [0, 0], sizes = [8, 32], strides = [1, 1]} : vector<16x32xf32> to vector<8x32xf32>
    %cst_25 = arith.constant dense<0x7F800000> : vector<32xf32>
    %38 = vector.multi_reduction <minimumf>, %37, %cst_25 [0] : vector<8x32xf32> to vector<32xf32>
    %39 = vector.shape_cast %38 : vector<32xf32> to vector<1x32xf32>
    %40 = vector.extract_strided_slice %36 {offsets = [8, 0], sizes = [8, 32], strides = [1, 1]} : vector<16x32xf32> to vector<8x32xf32>
    %cst_26 = arith.constant dense<0x7F800000> : vector<32xf32>
    %41 = vector.multi_reduction <minimumf>, %40, %cst_26 [0] : vector<8x32xf32> to vector<32xf32>
    %42 = vector.shape_cast %41 : vector<32xf32> to vector<1x32xf32>
    %43 = tpu.concatenate %39, %42 in 0 : vector<1x32xf32>, vector<1x32xf32> -> vector<2x32xf32>
    %cst_27 = arith.constant dense<0.000000e+00> : vector<16x32xf32>
    %44 = tpu.matmul %36, %12, %cst_27 {dimension_numbers = #tpu.dot_dimension_numbers<[1], [0], [0], [1], [0, 0, 1, 1], [], []>} : vector<16x32xf32>, vector<32x32xf32>, vector<16x32xf32> -> vector<16x32xf32>
    %45 = vector.broadcast %18 : vector<1x32xf32> to vector<16x32xf32>
    %46 = arith.addf %44, %45 : vector<16x32xf32>
    %cst_28 = arith.constant dense<0.000000e+00> : vector<16x32xf32>
    %47 = tpu.matmul %6, %46, %cst_28 {dimension_numbers = #tpu.dot_dimension_numbers<[1], [0], [0], [1], [0, 0, 1, 1], [], []>} : vector<16x16xf32>, vector<16x32xf32>, vector<16x32xf32> -> vector<16x32xf32>
    %cst_29 = arith.constant 0.000000e+00 : f32
    %48 = vector.broadcast %cst_29 : f32 to vector<16x32xf32>
    %49 = arith.maximumf %47, %48 : vector<16x32xf32>
    %50 = vector.broadcast %23 : vector<16x1xf32> to vector<16x32xf32>
    %51 = arith.mulf %49, %50 : vector<16x32xf32>
    %52 = vector.broadcast %24 : vector<16x1xf32> to vector<16x32xf32>
    %53 = arith.addf %51, %52 : vector<16x32xf32>
    %54 = vector.extract_strided_slice %53 {offsets = [0, 0], sizes = [8, 32], strides = [1, 1]} : vector<16x32xf32> to vector<8x32xf32>
    %cst_30 = arith.constant dense<0x7F800000> : vector<32xf32>
    %55 = vector.multi_reduction <minimumf>, %54, %cst_30 [0] : vector<8x32xf32> to vector<32xf32>
    %56 = vector.shape_cast %55 : vector<32xf32> to vector<1x32xf32>
    %57 = vector.extract_strided_slice %53 {offsets = [8, 0], sizes = [8, 32], strides = [1, 1]} : vector<16x32xf32> to vector<8x32xf32>
    %cst_31 = arith.constant dense<0x7F800000> : vector<32xf32>
    %58 = vector.multi_reduction <minimumf>, %57, %cst_31 [0] : vector<8x32xf32> to vector<32xf32>
    %59 = vector.shape_cast %58 : vector<32xf32> to vector<1x32xf32>
    %60 = tpu.concatenate %56, %59 in 0 : vector<1x32xf32>, vector<1x32xf32> -> vector<2x32xf32>
    %61 = arith.addf %60, %43 : vector<2x32xf32>
    %cst_32 = arith.constant dense<0.000000e+00> : vector<2x4xf32>
    %62 = tpu.matmul %61, %14, %cst_32 {dimension_numbers = #tpu.dot_dimension_numbers<[1], [0], [0], [1], [0, 0, 1, 1], [], []>} : vector<2x32xf32>, vector<32x4xf32>, vector<2x4xf32> -> vector<2x4xf32>
    %c0_i32 = arith.constant 0 : i32
    %63 = arith.cmpi eq, %arg1, %c0_i32 : i32
    %64 = arith.extui %63 : i1 to i32
    %c0_i32_33 = arith.constant 0 : i32
    %65 = arith.cmpi ne, %64, %c0_i32_33 : i32
    scf.if %65 {
      %cst_40 = arith.constant 0.000000e+00 : f32
      %70 = vector.broadcast %cst_40 : f32 to vector<1x2x4xf32>
      %c0_41 = arith.constant 0 : index
      %c0_42 = arith.constant 0 : index
      %c0_43 = arith.constant 0 : index
      %71 = vector.load %arg10[%c0_41, %c0_42, %c0_43] : memref<1x2x4xf32, #tpu.memory_space<vmem>>, vector<1x2x4xf32>
      tpu.vector_store %arg10[%c0_41, %c0_42, %c0_43], %70 {strides = array<i32>} : memref<1x2x4xf32, #tpu.memory_space<vmem>>, vector<1x2x4xf32>,
    } else {
    }
    %c0_34 = arith.constant 0 : index
    %c0_35 = arith.constant 0 : index
    %c0_36 = arith.constant 0 : index
    %66 = vector.load %arg10[%c0_34, %c0_35, %c0_36] : memref<1x2x4xf32, #tpu.memory_space<vmem>>, vector<1x2x4xf32>
    %67 = vector.shape_cast %62 : vector<2x4xf32> to vector<1x2x4xf32>
    %68 = arith.addf %66, %67 : vector<1x2x4xf32>
    %c0_37 = arith.constant 0 : index
    %c0_38 = arith.constant 0 : index
    %c0_39 = arith.constant 0 : index
    %69 = vector.load %arg10[%c0_37, %c0_38, %c0_39] : memref<1x2x4xf32, #tpu.memory_space<vmem>>, vector<1x2x4xf32>
    tpu.vector_store %arg10[%c0_37, %c0_38, %c0_39], %68 {strides = array<i32>} : memref<1x2x4xf32, #tpu.memory_space<vmem>>, vector<1x2x4xf32>,
    return
  }
  func.func @transform_0(%arg0: i32, %arg1: i32) -> (i32, i32) {
    %c0_i32 = arith.constant 0 : i32
    %c0_i32_0 = arith.constant 0 : i32
    %c0_i32_1 = arith.constant 0 : i32
    return %c0_i32, %c0_i32_0 : i32, i32
  }
  func.func @transform_1(%arg0: i32, %arg1: i32) -> (i32, i32) {
    %c0_i32 = arith.constant 0 : i32
    %c0_i32_0 = arith.constant 0 : i32
    %c0_i32_1 = arith.constant 0 : i32
    return %c0_i32, %c0_i32_0 : i32, i32
  }
  func.func @transform_2(%arg0: i32, %arg1: i32) -> (i32, i32, i32) {
    %c1_i32 = arith.constant 1 : i32
    %0 = arith.muli %arg0, %c1_i32 : i32
    %1 = arith.addi %0, %arg1 : i32
    %c0_i32 = arith.constant 0 : i32
    %c0_i32_0 = arith.constant 0 : i32
    %c0_i32_1 = arith.constant 0 : i32
    return %1, %c0_i32, %c0_i32_0 : i32, i32, i32
  }
  func.func @transform_3(%arg0: i32, %arg1: i32) -> (i32, i32, i32) {
    %c1_i32 = arith.constant 1 : i32
    %0 = arith.muli %arg0, %c1_i32 : i32
    %1 = arith.addi %0, %arg1 : i32
    %c0_i32 = arith.constant 0 : i32
    %c0_i32_0 = arith.constant 0 : i32
    %c0_i32_1 = arith.constant 0 : i32
    return %1, %c0_i32, %c0_i32_0 : i32, i32, i32
  }
  func.func @transform_4(%arg0: i32, %arg1: i32) -> (i32, i32, i32) {
    %c1_i32 = arith.constant 1 : i32
    %0 = arith.muli %arg0, %c1_i32 : i32
    %1 = arith.addi %0, %arg1 : i32
    %c0_i32 = arith.constant 0 : i32
    %c0_i32_0 = arith.constant 0 : i32
    %c0_i32_1 = arith.constant 0 : i32
    return %1, %c0_i32, %c0_i32_0 : i32, i32, i32
  }
  func.func @transform_5(%arg0: i32, %arg1: i32) -> (i32, i32, i32) {
    %c1_i32 = arith.constant 1 : i32
    %0 = arith.muli %arg0, %c1_i32 : i32
    %1 = arith.addi %0, %arg1 : i32
    %c0_i32 = arith.constant 0 : i32
    %c0_i32_0 = arith.constant 0 : i32
    %c0_i32_1 = arith.constant 0 : i32
    return %1, %c0_i32, %c0_i32_0 : i32, i32, i32
  }
  func.func @transform_6(%arg0: i32, %arg1: i32) -> (i32, i32, i32) {
    %c1_i32 = arith.constant 1 : i32
    %0 = arith.muli %arg0, %c1_i32 : i32
    %1 = arith.addi %0, %arg1 : i32
    %c0_i32 = arith.constant 0 : i32
    %c0_i32_0 = arith.constant 0 : i32
    %c0_i32_1 = arith.constant 0 : i32
    return %1, %c0_i32, %c0_i32_0 : i32, i32, i32
  }
  func.func @transform_7(%arg0: i32, %arg1: i32) -> (i32, i32, i32) {
    %c1_i32 = arith.constant 1 : i32
    %0 = arith.muli %arg0, %c1_i32 : i32
    %1 = arith.addi %0, %arg1 : i32
    %c0_i32 = arith.constant 0 : i32
    %c0_i32_0 = arith.constant 0 : i32
    %c0_i32_1 = arith.constant 0 : i32
    return %1, %c0_i32, %c0_i32_0 : i32, i32, i32
  }
  func.func @transform_8(%arg0: i32, %arg1: i32) -> (i32, i32, i32) {
    %c0_i32 = arith.constant 0 : i32
    %c0_i32_0 = arith.constant 0 : i32
    %c0_i32_1 = arith.constant 0 : i32
    return %arg0, %c0_i32, %c0_i32_0 : i32, i32, i32
  }
}

</mosaic_0001>

<bundles_post_ra>
// kernel: gnntep_forward.1
= control target key start
LH: loop header
LB: loop body
LE: loop exit
PB: predicated region body
PF: predicated region fallthrough
CT: control target
= control target key end

     0   :  { %s1795_s0 = inlined_call_operand.vmem [shape: f32[16,16], index: 0, kind: input, shape index: {}]   ;;  %s1796_s1 = inlined_call_operand.hbm [shape: f32[16,16], index: 1, kind: input, shape index: {}]   ;;  %s1797_s2 = inlined_call_operand.vmem [shape: f32[2,16,16], index: 2, kind: input, shape index: {}]   ;;  %s1798_s3 = inlined_call_operand.hbm [shape: f32[2,16,32], index: 3, kind: input, shape index: {}]   ;;  %s1799_s4 = inlined_call_operand.vmem [shape: f32[2,32,32], index: 4, kind: input, shape index: {}]   ;;  %s1800_s5 = inlined_call_operand.vmem [shape: f32[2,32,4], index: 5, kind: input, shape index: {}]   ;;  %s1801_s6 = inlined_call_operand.hbm [shape: f32[2,2,32], index: 6, kind: input, shape index: {}]   ;;  %s1802_s7 = inlined_call_operand.vmem [shape: f32[2,16,4], index: 7, kind: input, shape index: {}]   ;;  %s1803_s8 = inlined_call_operand.vmem [shape: f32[2,2,4], index: 8, kind: output, shape index: {}]  }
   0x1   :  { %1808 = sst [smem:[#allocation9_spill]] %s1798_s3 }
   0x2   :  { %1809 = sst [smem:[#allocation10_spill]] %s1801_s6 }
   0x3   :  { %13 = vsyncpa [#allocation3], 0 }
   0x4   :  { %14 = vsyncpa [#allocation5], 0 }
   0x5   :  { %16 = vsyncpa [#allocation5 + $0x1], 0  ;;  %s1560_s27 = smov 0   ;;  %s1562_s28 = smov 0  }
   0x6   :  { %s1564_s29 = smov 0   ;;  %s1566_s30 = smov 0  }
   0x7   :  { %s1568_s9 = smov 0   ;;  %s1570_s10 = smov 0  }
   0x8 LB: > { %s34_s11 = sadd.s32 1, %s1498_s9  ;;  %s113_s12 = sadd.s32 1, %s1490_s29  ;;  %s1502_s10 = sphi %s1570_s10, %s22_s10   ;;  %s1498_s9 = sphi %s1568_s9, %s1826_s9   ;;  %s1494_s30 = sphi %s1566_s30, %s1825_s30   ;;  %s1490_s29 = sphi %s1564_s29, %s1824_s29   ;;  %s1486_s28 = sphi %s1562_s28, %s1823_s28   ;;  %s1482_s27 = sphi %s1560_s27, %s1822_s27  }
   0x9   : > { %p36_p0 = scmp.ge.s32.totalorder %s34_s11, 2  ;;  %p120_p1 = scmp.ne.s32.totalorder %s1490_s29, %s1486_s28 }
   0xa   : > { %p121_p2 = scmp.eq.s32.totalorder %s1502_s10, 0  ;;  %p1301_p5 = scmp.lt.s32.totalorder %s1502_s10, 2 }
   0xb   : > { %s1828_s11 = smov (%p36_p0, %s34_s11), 0  ;;  %s314_s15 = sand.u32 1, %s1502_s10  }
   0xc   : > { %p1597_p3 = por %p121_p2, %p120_p1  ;;  %s110_s14 = ssub.s32 %s1498_s9, %s1828_s11 }
   0xd   : > { %p111_p4 = scmp.eq.s32.totalorder %s110_s14, 0  ;;  %s316_s16 = sand.u32 1, %s1490_s29  }
   0xe   : > { %s1181_s18 = sshll.u32 %s316_s16, 4  ;;  %s1210_s19 = sshll.u32 %s1498_s9, 8 }
   0xf   : > { %s1607_s17 = scalar_select %p111_p4, %s1490_s29, %s113_s12  }
  0x10   : > { %s1811_s3 = sld [smem:[#allocation9_spill]]  ;;  %s318_s23 = scalar_lea.vmem [#allocation4], %s1181_s18 }
  0x11   : > { %s326_s24 = sshll.u32 %s318_s23, 4  ;;  %p1617_p6 = pnand %p1301_p5, %p1597_p3  ;;  %s327_s24 = int_to_ptr.vmem [resolvable:$true] %s326_s24 }
  0x12   : > { %s1621_s26 = scalar_lea.sflag [#allocation5], %s314_s15  ;;  %s1379_s12 = scalar_lea.vmem %s327_s24, 256 }
  0x13   : > { %p1807_p7 = pneg %p1617_p6  ;;  %p1380_p8 = scmp.ne.s32.totalorder %s327_s24, %s1379_s12 }
  0x14   : > { %s1504_s14 = smov [#allocation4]  }
  0x15   : > { %p1382_p9 = pnand %p1380_p8, %p1807_p7  ;;  %s1384_s18 = sshll.u32 %s1504_s14, 4  ;;  %s1385_s18 = int_to_ptr.vmem [resolvable:$false] %s1384_s18 }
  0x16   : > { %s325_s22 = scalar_lea.hbm %s1811_s3, %s1210_s19  ;;  %s1386_s13 = scalar_lea.vmem %s1385_s18, 512 }
  0x17   : > { %p1383_p10 = pneg %p1382_p9  ;;  %p1387_p11 = scmp.lt.s32.totalorder %s327_s24, %s1385_s18 }
  0x18   : > { %p1388_p12 = scmp.lt.s32.totalorder %s1386_s13, %s1379_s12 }
  0x1a   : > { %p1389_p13 = por %p1388_p12, %p1387_p11 }
  0x1c   : > { %p1390_p0 = pnand %p1389_p13, %p1383_p10 }
  0x1e   : > { %1393 = shalt.err (!%p1390_p0)
}
  0x1f   : > { %s1805_s19 = smov 128   ;;  %s1806_s15 = smov 8  }
  0x20   : > { %1296 = dma.hbm_to_vmem [thread:$0]  (!%p1617_p6), %s325_s22, 256, %s327_s24, %s1621_s26, %s1805_s19, %s1805_s19, %s1806_s15  }
  0x21   : > { %s1804_s20 = sadd.s32 4294967295, %s1502_s10   ;;  %p126_p1 = scmp.ne.s32.totalorder %s1486_s28, %s1482_s27 }
  0x22   : > { %p1639_p2 = scmp.eq.s32.totalorder %s1804_s20, 0  ;;  %p1178_p3 = scmp.ge.s32.totalorder %s1502_s10, 1 }
  0x23   : > { %p275_p4 = scmp.lt.s32.totalorder %s1502_s10, 3  ;;  %s1507_s27 = smov [#allocation2]  }
  0x24   : > { %p1647_p5 = por %p1639_p2, %p126_p1  ;;  %s290_s22 = sshll.u32 %s1507_s27, 4  ;;  %s291_s22 = int_to_ptr.vmem [resolvable:$true] %s290_s22 }
  0x25   : > { %p1651_p8 = pnand %p1178_p3, %p275_p4  ;;  %s1184_s24 = sshll.u32 %s316_s16, 1 }
  0x26   : > { %s1185_s14 = sshll.u32 %s1498_s9, 5  ;;  %s1817_s6 = sld [smem:[#allocation10_spill]] }
  0x27   : > { %p1289_p9 = pneg %p1651_p8  ;;  %s360_s15 = scalar_lea.vmem [#allocation6], %s1184_s24 }
  0x28   : > { %s368_s3 = sshll.u32 %s360_s15, 4  ;;  %s1405_s16 = scalar_lea.vmem %s291_s22, 256  ;;  %s369_s3 = int_to_ptr.vmem [resolvable:$true] %s368_s3 }
  0x29   : > { %p1662_p10 = pnand %p1289_p9, %p1639_p2  ;;  %p1406_p12 = scmp.ne.s32.totalorder %s291_s22, %s1405_s16 }
  0x2a   : > { %p1413_p1 = scmp.lt.s32.totalorder %s291_s22, %s291_s22  ;;  %p1414_p3 = scmp.lt.s32.totalorder %s1405_s16, %s1405_s16 }
  0x2b   : > { %p1396_p11 = pneg %p1662_p10 }
  0x2c   : > { %s1669_s19 = scalar_lea.hbm %s1817_s6, %s1185_s14  ;;  %p1415_p4 = por %p1414_p3, %p1413_p1 }
  0x2d   : > { %p1408_p13 = pnand %p1406_p12, %p1396_p11 }
  0x2f   : > { %p1409_p0 = pneg %p1408_p13 }
  0x31   : > { %p1416_p9 = pnand %p1415_p4, %p1409_p0 }
  0x33   : > { %1419 = shalt.err (!%p1416_p9)
}
  0x34   : > { %s1818_s20 = smov 8   ;;  %s1819_s27 = smov 128  }
  0x35   : > { %1292 = dma.hbm_to_vmem [thread:$0]  (!%p1662_p10), %s1796_s1, 256, %s291_s22, [#allocation3], %s1819_s27, %s1819_s27, %s1818_s20  }
  0x36   : > { %s1433_s15 = scalar_lea.vmem %s369_s3, 32  ;;  %p1820_p11 = pneg %p1617_p6 }
  0x37   : > { %p1434_p7 = scmp.ne.s32.totalorder %s369_s3, %s1433_s15  ;;  %s1508_s13 = smov [#allocation6]  }
  0x38   : > { %s1438_s16 = sshll.u32 %s1508_s13, 4  ;;  %s1439_s16 = int_to_ptr.vmem [resolvable:$false] %s1438_s16 }
  0x39   : > { %p1436_p12 = pnand %p1434_p7, %p1820_p11  ;;  %s1440_s6 = scalar_lea.vmem %s1439_s16, 64 }
  0x3a   : > { %p1441_p0 = scmp.lt.s32.totalorder %s369_s3, %s1439_s16  ;;  %p1442_p1 = scmp.lt.s32.totalorder %s1440_s6, %s1433_s15 }
  0x3b   : > { %p1437_p13 = pneg %p1436_p12 }
  0x3c   : > { %p1443_p3 = por %p1442_p1, %p1441_p0 }
  0x3e   : > { %p1444_p4 = pnand %p1443_p3, %p1437_p13 }
  0x40   : > { %1447 = shalt.err (!%p1444_p4)
}
  0x41   : > { %1299 = dma.hbm_to_vmem [thread:$0]  (!%p1617_p6), %s1669_s19, 32, %s369_s3, %s1621_s26  }
  0x42   : > { %387 = sbr.rel (%p1651_p8) target bundleno = 1099 (0x44b), region = 52 }
  0x47   : > { %1473 = dma.done.wait (%p1639_p2), [#allocation3], 256  }
  0x48   : > { %1475 = vsyncadd (%p1639_p2), [#allocation3], 4294967040  ;;  %s1821_s22 = sadd.s32 4294967295, %s1502_s10   ;;  %s395_s18 = sand.u32 1, %s1486_s28  }
  0x49   : > { %s393_s6 = sand.u32 1, %s1821_s22   ;;  %s1699_s25 = sshll.u32 %s395_s18, 4 }
  0x4a   : > { %s394_s3 = scalar_lea.sflag [#allocation5], %s393_s6  ;;  %s397_s26 = scalar_lea.vmem [#allocation4], %s1699_s25 }
  0x4b   : > { %1477 = dma.done.wait (%p1647_p5), %s394_s3, 288  }
  0x4c   : > { %1479 = vsyncadd (%p1647_p5), %s394_s3, 4294967008  ;;  %p468_p6 = scmp.lt.s32.totalorder %s1494_s30, 1  ;;  %v502_v0 = vld [vmem:[%s1795_s0 + $0x8] sm:$0xff]  ;;  %v501_v1 = vld [vmem:[%s1795_s0] sm:$0xff]  ;;  %vm511_vm0 = vcmask 130048   ;;  %v1509_v13 = vmov 0   ;;  %v612_v24 = vlaneseq }
  0x4d   : > { %1238 = vmatprep.subr.mxu0 %v502_v0  ;;  %v507_v5 = vld [vmem:[#allocation2] sm:$0xff]  ;;  %v508_v6 = vld [vmem:[#allocation2 + $0x8] sm:$0xff]  ;;  %1360 = vset.pattern.permute.xlu1 %v1509_v13  ;;  %v1510_v16 = vmov 1   ;;  %vm723_vm1 = vcmask 261120   ;;  %vm738_vm2 = vcmask 1040384   ;;  %v1511_v62 = vmov 2  }
  0x4e   : > { %s1830_s30 = smov (!%p468_p6, %s1494_s30), 1  ;;  %1239 = vmatpush3.msra.mxu0 %v502_v0  ;;  %v519_v10 = vld [vmem:[%s397_s26 + $0x8] sm:$0xff]  ;;  %v518_v11 = vld [vmem:[%s397_s26] sm:$0xff]  ;;  %1361 = vset.pattern.permute.xlu0 %v1510_v16  ;;  %s1189_s26 = sshll.u32 %s395_s18, 1  ;;  %v613_v25 = vshrl.u32 %v612_v24, 7  ;;  %v1512_v63 = vmov 3  }
  0x4f   : > { %s1211_s19 = sshll.u32 %s1830_s30, 4  ;;  %1240 = vmatprep.subr.mxu0 %v501_v1  ;;  %1245 = vmatprep.subr.mxu1 %v519_v10  ;;  %s1212_s22 = sshll.u32 %s1830_s30, 5  ;;  %vm1514_vm3 = vmmov 0   ;;  %vm1015_vm4 = vcmask 25600  }
  0x50   : > { %s472_s20 = scalar_lea.vmem %s1797_s2, %s1211_s19  ;;  %1241 = vmatpush3.msra.mxu0 %v501_v1  ;;  %1246 = vmatpush3.msra.mxu1 %v519_v10  ;;  %s495_s16 = scalar_lea.vmem %s1802_s7, %s1211_s19  ;;  %v614_v27 = vsub.s32 0, %v613_v25  ;;  %v742_v0 = vsub.s32 1, %v613_v25 }
  0x51   : > { %v503_v2 = vld [vmem:[%s472_s20] sm:$0xff]  ;;  %v504_v3 = vld [vmem:[%s472_s20 + $0x8] sm:$0xff]  ;;  %1247 = vmatprep.subr.mxu1 %v518_v11  ;;  %s480_s3 = scalar_lea.vmem %s1799_s4, %s1212_s22  ;;  %s406_s19 = scalar_lea.vmem [#allocation6], %s1189_s26 }
  0x52   : > { %v505_v4 = vmax.f32 %v503_v2, 0.0  ;;  %v506_v7 = vmax.f32 %v504_v3, 0.0  ;;  %1248 = vmatpush3.msra.mxu1 %v518_v11  ;;  %v1729_v14 = vld [vmem:[%s495_s16] sm:$0xff]  ;;  %v1734_v17 = vld [vmem:[%s495_s16 + $0x8] sm:$0xff]  ;;  %v523_v20 = vld [vmem:[%s480_s3 + $0x18] sm:$0xff]  ;;  %s487_s12 = scalar_lea.vmem %s1800_s5, %s1212_s22  ;;  %s1198_s20 = sshll.u32 %s1830_s30, 1 }
  0x53   : > { %703 = vperm.xlu1 %1360, %v1729_v14   ;;  %1252 = vmatprep.subr.mxu0 %v523_v20  ;;  %v522_v21 = vld [vmem:[%s480_s3 + $0x10] sm:$0xff]  ;;  %v521_v22 = vld [vmem:[%s480_s3 + $0x8] sm:$0xff]  ;;  %v520_v23 = vld [vmem:[%s480_s3] sm:$0xff]  ;;  %s500_s24 = scalar_lea.vmem %s1803_s8, %s1198_s20 }
  0x54   : > { %v509_v8 = vmul.f32 %v507_v5, %v505_v4  ;;  %v1720_v9 = vmul.f32 %v508_v6, %v506_v7  ;;  %v528_v28 = vld [vmem:[%s406_s19] sm:$0x3]  ;;  %v1513_v6 = vmov 0.0   ;;  %v527_v7 = vld [vmem:[%s487_s12 + $0x18] sm:$0xff]  ;;  %v525_v10 = vld [vmem:[%s487_s12 + $0x8] sm:$0xff] }
  0x55   : > { %v615_v31 = vrot.slane %v528_v28, %v614_v27  ;;  %v743_v1 = vrot.slane %v528_v28, %v742_v0  ;;  %v524_v11 = vld [vmem:[%s487_s12] sm:$0xff]  ;;  %1016 = vst.msk [vmem:[%s500_s24] sm:$0x3] %vm1015_vm4, %v1513_v6 }
  0x56   : > { %1242 = vmatprep.mubr.msk.f32.mxu0 %vm511_vm0, %v509_v8  ;;  %v512_v12 = vsel %vm511_vm0, %v509_v8, 0.0  ;;  %v515_v15 = vsel %vm511_vm0, %v1720_v9, 0.0 }
  0x57   : > { %1243 = vmatmul.mubr.msk.f32.vlgmr.msra.gmra.mxu0 %vm511_vm0, %v1720_v9  ;;  %513 = vadd.xlane.f32.xlu0 %v512_v12 }
  0x58   : > { %708 = vperm.xlu1 %1360, %v1734_v17   ;;  %1253 = vmatpush3.msra.mxu0 %v523_v20 }
  0x59   : > { %1254 = vmatprep.subr.mxu0 %v522_v21 }
  0x5a   : > { %1255 = vmatpush3.msra.mxu0 %v522_v21 }
  0x5b   : > { %516 = vadd.xlane.f32.xlu0 %v515_v15  ;;  %1256 = vmatprep.subr.mxu0 %v521_v22 }
  0x5c   : > { %1362 = vset.pattern.permute.xlu1 %v1510_v16  ;;  %1257 = vmatpush3.msra.mxu0 %v521_v22 }
  0x5d   : > { %718 = vperm.xlu1 %1362, %v1734_v17   ;;  %1258 = vmatprep.subr.mxu0 %v520_v23 }
  0x5e   : > { %1259 = vmatpush3.msra.mxu0 %v520_v23 }
  0x61   : > { %1363 = vset.pattern.permute.xlu1 %v1511_v62 }
  0x62   : > { %903 = vperm.xlu1 %1363, %v1729_v14  }
  0x66   : > { %907 = vperm.xlu1 %1363, %v1734_v17  }
  0x6a   : > { %1364 = vset.pattern.permute.xlu1 %v1512_v63 }
  0x6b   : > { %913 = vperm.xlu1 %1364, %v1729_v14  }
  0x6f   : > { %917 = vperm.xlu1 %1364, %v1734_v17  }
  0x71   : > { %714 = vperm.xlu0 %1361, %v1729_v14  }
  0x75   : > { %1365 = vset.pattern.permute.xlu0 %v1512_v63 }
  0xce   : > { %v704_v29 = vpop.permute.xlu1 %703 }
  0xd3   : > { %v709_v33 = vpop.permute.xlu1 %708 }
  0xd8   : > { %v719_v40 = vpop.permute.xlu1 %718 }
  0xe0   : > { %v514_v26 = vpop.xlane.xlu0 %513 }
  0xe1   : > { %v616_v35 = vmul.f32 %v615_v31, %v514_v26 }
  0xe4   : > { %v517_v30 = vpop.xlane.xlu0 %516 }
  0xe5   : > { %v617_v32 = vmul.f32 %v615_v31, %v517_v30 }
  0xec   : > { %v715_v43 = vpop.permute.xlu0 %714 }
 0x117   : > { %v1244_v18 = vpop.f32.mrf.mxu0 }
 0x119   : > { %v603_v19 = vpop.f32.mrf.mxu0 }
 0x11a   : > { %1249 = vmatprep.mubr.msk.f32.mxu1 %vm511_vm0, %v603_v19 }
 0x11b   : > { %1250 = vmatmul.mubr.msk.f32.vlgmr.msra.gmra.mxu1 %vm511_vm0, %v1244_v18 }
 0x11c   : > { %1267 = vmatprep.mubr.msk.f32.mxu1 %vm511_vm0, %v509_v8  ;;  %v526_v8 = vld [vmem:[%s487_s12 + $0x10] sm:$0xff] }
 0x1db   : > { %v1251_v34 = vpop.f32.mrf.mxu1 }
 0x1dc   : > { %v696_v36 = vadd.f32 %v1251_v34, %v617_v32 }
 0x1dd   : > { %v690_v37 = vpop.f32.mrf.mxu1 }
 0x1de   : > { %v700_v38 = vmax.f32 %v696_v36, 0.0  ;;  %v691_v39 = vadd.f32 %v690_v37, %v616_v35 }
 0x1e0   : > { %v699_v41 = vmax.f32 %v691_v39, 0.0  ;;  %v712_v42 = vmul.f32 %v709_v33, %v700_v38  ;;  %v1017_v39 = vld [vmem:[%s500_s24] sm:$0x3] }
 0x1e2   : > { %v722_v44 = vadd.f32 %v719_v40, %v712_v42  ;;  %v711_v45 = vmul.f32 %v704_v29, %v699_v41 }
 0x1e4   : > { %v731_v46 = vsel %vm723_vm1, %v722_v44, inf  ;;  %v721_v47 = vadd.f32 %v715_v43, %v711_v45 }
 0x1e5   : > { %v732_v48 = vrot.slane %v731_v46, 4 }
 0x1e6   : > { %v724_v49 = vsel %vm723_vm1, %v721_v47, inf  ;;  %1260 = vmatprep.mubr.msk.f32.mxu0 %vm723_vm1, %v721_v47 }
 0x1e7   : > { %v733_v50 = vmin.f32 %v731_v46, %v732_v48  ;;  %v725_v51 = vrot.slane %v724_v49, 4  ;;  %1261 = vmatmul.mubr.msk.f32.vlgmr.msra.gmra.mxu0 %vm723_vm1, %v722_v44 }
 0x1e9   : > { %v734_v52 = vrot.slane %v733_v50, 2  ;;  %v726_v53 = vmin.f32 %v724_v49, %v725_v51 }
 0x1eb   : > { %v735_v54 = vmin.f32 %v733_v50, %v734_v52  ;;  %v727_v55 = vrot.slane %v726_v53, 2 }
 0x1ed   : > { %v736_v56 = vrot.slane %v735_v54, 1  ;;  %v728_v57 = vmin.f32 %v726_v53, %v727_v55 }
 0x1ef   : > { %v729_v58 = vrot.slane %v728_v57, 1  ;;  %v737_v59 = vmin.f32 %v735_v54, %v736_v56 }
 0x1f1   : > { %v730_v60 = vmin.f32 %v728_v57, %v729_v58 }
 0x1f3   : > { %v1755_v61 = vsel %vm738_vm2, %v730_v60, %v737_v59 }
 0x2a7   : > { %v1262_v2 = vpop.f32.mrf.mxu0 }
 0x2a8   : > { %v822_v3 = vadd.f32 %v1262_v2, %v743_v1 }
 0x2a9   : > { %v816_v4 = vpop.f32.mrf.mxu0 }
 0x2aa   : > { %v817_v5 = vadd.f32 %v816_v4, %v743_v1  ;;  %1263 = vmatprep.subr.mxu1 %v822_v3 }
 0x2ab   : > { %1264 = vmatpush3.msra.mxu1 %v822_v3 }
 0x2ac   : > { %1265 = vmatprep.subr.mxu1 %v817_v5 }
 0x2ad   : > { %1266 = vmatpush3.msra.mxu1 %v817_v5 }
 0x2ae   : > { %1268 = vmatmul.mubr.msk.f32.vlgmr.msra.gmra.mxu1 %vm511_vm0, %v1720_v9  ;;  %1270 = vmatprep.subr.mxu1 %v1513_v6  ;;  %v904_v9 = vpop.permute.xlu1 %903 }
 0x2af   : > { %1271 = vmatpush3.msra.mxu1 %v527_v7  ;;  %1278 = vmatprep.mubr.msk.f32.mxu1 %vm1514_vm3, %v1513_v6 }
 0x2b0   : > { %1272 = vmatprep.subr.mxu1 %v1513_v6 }
 0x2b1   : > { %1273 = vmatpush3.msra.mxu1 %v526_v8 }
 0x2b2   : > { %1274 = vmatprep.subr.mxu1 %v1513_v6  ;;  %v908_v12 = vpop.permute.xlu1 %907 }
 0x2b3   : > { %1275 = vmatpush3.msra.mxu1 %v525_v10 }
 0x2b4   : > { %1276 = vmatprep.subr.mxu1 %v1513_v6 }
 0x2b5   : > { %1277 = vmatpush3.msra.mxu1 %v524_v11 }
 0x2b6   : > { %v914_v13 = vpop.permute.xlu1 %913 }
 0x2ba   : > { %v918_v19 = vpop.permute.xlu1 %917 }
 0x36e   : > { %v1269_v14 = vpop.f32.mrf.mxu1 }
 0x36f   : > { %v901_v15 = vmax.f32 %v1269_v14, 0.0 }
 0x370   : > { %v891_v16 = vpop.f32.mrf.mxu1 }
 0x371   : > { %v900_v17 = vmax.f32 %v891_v16, 0.0  ;;  %v911_v18 = vmul.f32 %v908_v12, %v901_v15 }
 0x373   : > { %v910_v20 = vmul.f32 %v904_v9, %v900_v17  ;;  %v921_v21 = vadd.f32 %v918_v19, %v911_v18 }
 0x375   : > { %v920_v22 = vadd.f32 %v914_v13, %v910_v20  ;;  %v929_v23 = vsel %vm723_vm1, %v921_v21, inf }
 0x376   : > { %v930_v24 = vrot.slane %v929_v23, 4 }
 0x377   : > { %v922_v25 = vsel %vm723_vm1, %v920_v22, inf }
 0x378   : > { %v923_v26 = vrot.slane %v922_v25, 4  ;;  %v931_v27 = vmin.f32 %v929_v23, %v930_v24 }
 0x37a   : > { %v924_v28 = vmin.f32 %v922_v25, %v923_v26  ;;  %v932_v29 = vrot.slane %v931_v27, 2 }
 0x37c   : > { %v925_v30 = vrot.slane %v924_v28, 2  ;;  %v933_v31 = vmin.f32 %v931_v27, %v932_v29 }
 0x37e   : > { %v926_v32 = vmin.f32 %v924_v28, %v925_v30  ;;  %v934_v33 = vrot.slane %v933_v31, 1 }
 0x380   : > { %v927_v34 = vrot.slane %v926_v32, 1  ;;  %v935_v36 = vmin.f32 %v933_v31, %v934_v33 }
 0x382   : > { %v928_v35 = vmin.f32 %v926_v32, %v927_v34 }
 0x384   : > { %v936_v37 = vsel %vm738_vm2, %v928_v35, %v935_v36 }
 0x385   : > { %v937_v38 = vadd.f32 %v936_v37, %v1755_v61 }
 0x387   : > { %1279 = vmatmul.mubr.msk.f32.vlgmr.msra.gmra.mxu1 %vm723_vm1, %v937_v38 }
 0x447   : > { %v1007_v40 = vpop.f32.mrf.mxu1 }
 0x448   : > { %v1018_v41 = vadd.f32 %v1017_v39, %v1007_v40 }
 0x449   : > { %v1280_v42 = vpop.f32.mrf.mxu1 }
 0x44a   : > { %1020 = vst.msk [vmem:[%s500_s24] sm:$0x3] %vm1015_vm4, %v1018_v41 }
 0x44b PF: > { %s22_s10 = sadd.s32 1, %s1502_s10   ;;  %s1822_s27 = smov %s1486_s28 }
 0x44c   : > { %p19_p7 = scmp.ge.s32.totalorder %s22_s10, 4   ;;  %s1823_s28 = smov %s1490_s29 }
 0x44d   : > { %s1824_s29 = smov %s1607_s17  ;;  %s1825_s30 = smov %s1498_s9 }
 0x44e   : > { %s1826_s9 = smov %s1828_s11  ;;  %21 = sbr.rel (!%p19_p7) target bundleno = 8 (0x8), region = 124 }
 0x453   :  { %1040 = vsyncpa [#allocation3], 1 }
 0x454   :  { %1042 = vsyncpa [#allocation3 + $0x1], 1 }
 0x455   :  { %1043 = vsyncpa [#allocation5], 1 }
 0x456   :  { %1045 = vsyncpa [#allocation5 + $0x1], 1 }

</bundles_post_ra>
